<compile_context>
chip_gen: v7x
topology: tpu7x:2x2x1
jax: 0.10.0
libtpu: 0.0.40
codegen_flags: <defaults>
</compile_context>

<pallas_src>
import functools
import math

import jax
import jax.numpy as jnp
from jax import lax
from jax.experimental import pallas as pl
from jax.experimental.pallas import tpu as pltpu


# ---------------------------------------------------------------------------
# Kernel
# ---------------------------------------------------------------------------
def _fused_conv_kernel(x_ref, w1_ref, b1_ref, w2_ref, b2_ref, o_ref,
                       patches_ref, *, H, W, HW_LANES, C_MID_PAD, B_BLK):
    """B_BLK images per grid step, channels on sublanes / pixels on lanes.

    x_ref       : (B_BLK, C_IN, HW_LANES)    input pixels
    w1_ref      : (C_MID_PAD, C_IN)          1x1 conv weight (rows 4..7 zero)
    b1_ref      : (C_MID_PAD, 1)             (entries 4..7 are 0.0)
    w2_ref      : (C_OUT, 9*C_MID_PAD)       3x3 weight, K ordered [tap, cin]
    b2_ref      : (C_OUT, 1)
    o_ref       : (B_BLK, C_OUT, HW_LANES)
    patches_ref : (9*C_MID_PAD, HW_LANES)    VMEM im2col scratch
    """
    # ---- per-tap edge-validity masks on the flattened pixel (lane) axis.
    #      Hoisted: they depend only on (ky, kx), never on the image. --------
    p = lax.broadcasted_iota(jnp.int32, (1, HW_LANES), 1)  # flat pixel index
    col = p % W                                            # x-coordinate
    row_ok = (p >= W, None, p < (H - 1) * W)               # ky = 0, 1, 2
    col_ok = (col >= 1, None, col <= W - 2)                # kx = 0, 1, 2
    tap_masks = []
    for ky in range(3):
        for kx in range(3):
            mr, mc = row_ok[ky], col_ok[kx]
            if mr is None:
                tap_masks.append(mc)
            elif mc is None:
                tap_masks.append(mr)
            else:
                tap_masks.append(mr & mc)

    # Weights / biases: loaded once per grid step, resident across the batch
    # loop (tiny: a few vregs).
    w1 = w1_ref[...]                                   # (C_MID_PAD, C_IN)
    b1 = b1_ref[...]                                   # (C_MID_PAD, 1)
    w2 = w2_ref[...]                                   # (C_OUT, 9*C_MID_PAD)
    b2 = b2_ref[...]                                   # (C_OUT, 1)

    def body(b, carry):
        x = x_ref[b]                                   # (C_IN, HW_LANES)

        # conv0: 1x1 conv == channel matmul + bias + ReLU.
        z1 = jnp.dot(w1, x, preferred_element_type=jnp.float32) + b1
        z1 = jnp.maximum(z1, 0.0)                      # (C_MID_PAD, HW_LANES)

        # conv1: tap (ky,kx) reads pixel p + s with s = (ky-1)*W + (kx-1):
        # lane-roll of z1 by -s (XLU), wrapped / out-of-image pixels zeroed by
        # the hoisted masks, then one aligned store per tap into the im2col
        # scratch (no concatenate relayout).
        for k in range(9):
            ky, kx = k // 3, k % 3
            s = (ky - 1) * W + (kx - 1)
            patch = z1 if s == 0 else pltpu.roll(z1, (-s) % HW_LANES, axis=1)
            if tap_masks[k] is not None:
                patch = jnp.where(tap_masks[k], patch, 0.0)
            patches_ref[pl.ds(k * C_MID_PAD, C_MID_PAD), :] = patch

        z2 = jnp.dot(w2, patches_ref[...],
                     preferred_element_type=jnp.float32) + b2
        o_ref[b] = jnp.maximum(z2, 0.0)                # (C_OUT, HW_LANES)
        return carry

    lax.fori_loop(0, B_BLK, body, None, unroll=True)


# ---------------------------------------------------------------------------
# Wrapper
# ---------------------------------------------------------------------------
def _vmem_capacity_bytes():
    try:
        return int(pltpu.get_tpu_info().vmem_capacity_bytes)
    except Exception:
        return 64 * 1024 * 1024      # v7x lower bound (conservative fallback)


def _pick_batch_block(n, c_in, c_out, hw_lanes, vmem_budget):
    """Amortize per-grid-step overhead, keep >= 2 grid steps for megacore,
    and keep double-buffered in/out blocks + scratch under the VMEM budget."""
    def fits(b):
        io_bytes = 2 * b * (c_in + c_out) * hw_lanes * 4   # double-buffered
        scratch = (9 * 8 + 8 + c_in) * hw_lanes * 4        # patches + z1 + x
        return io_bytes + scratch <= vmem_budget
    for b in (8, 4, 2):
        if n % b == 0 and n // b >= 2 and fits(b):
            return b
    return 1


def small_module_forward(x_nchw, params):
    """x_nchw: (N, 32, H, W) float32  ->  (N, 32, H, W) float32."""
    w1, b1, w2, b2 = params
    N, C_IN, H, W = x_nchw.shape
    C_MID_PAD = w1.shape[0]          # 8 (padded from 4)
    C_OUT = w2.shape[0]              # 32
    HW = H * W
    HW_LANES = ((HW + 127) // 128) * 128   # lane-dense last dim

    # Free layout change: NCHW -> (N, C, H*W).  No transpose.
    x2 = x_nchw.reshape(N, C_IN, HW)
    if HW_LANES != HW:
        x2 = jnp.pad(x2, ((0, 0), (0, 0), (0, HW_LANES - HW)))

    vmem_cap = _vmem_capacity_bytes()
    B_BLK = _pick_batch_block(N, C_IN, C_OUT, HW_LANES, vmem_cap // 3)
    grid = (N // B_BLK,)

    kernel = functools.partial(_fused_conv_kernel, H=H, W=W,
                               HW_LANES=HW_LANES, C_MID_PAD=C_MID_PAD,
                               B_BLK=B_BLK)

    out2 = pl.pallas_call(
        kernel,
        out_shape=jax.ShapeDtypeStruct((N, C_OUT, HW_LANES), jnp.float32),
        grid_spec=pltpu.PrefetchScalarGridSpec(
            num_scalar_prefetch=0,
            grid=grid,
            in_specs=[
                pl.BlockSpec((B_BLK, C_IN, HW_LANES), lambda n: (n, 0, 0)),
                pl.BlockSpec((C_MID_PAD, C_IN), lambda n: (0, 0)),
                pl.BlockSpec((C_MID_PAD, 1), lambda n: (0, 0)),
                pl.BlockSpec((C_OUT, 9 * C_MID_PAD), lambda n: (0, 0)),
                pl.BlockSpec((C_OUT, 1), lambda n: (0, 0)),
            ],
            out_specs=pl.BlockSpec((B_BLK, C_OUT, HW_LANES),
                                   lambda n: (n, 0, 0)),
            scratch_shapes=[
                pltpu.VMEM((9 * C_MID_PAD, HW_LANES), jnp.float32)],
        ),
        compiler_params=pltpu.CompilerParams(
            dimension_semantics=("parallel",),
            vmem_limit_bytes=int(vmem_cap // 2)),
    )(x2, w1, b1, w2, b2)

    if HW_LANES != HW:
        out2 = out2[:, :, :HW]
    # Free layout change back: (N, C_OUT, H*W) -> NCHW.
    return out2.reshape(N, C_OUT, H, W)


# ---------------------------------------------------------------------------
# Deterministic parameter init (matches shapes / init scheme of the module)
# ---------------------------------------------------------------------------
def init_params(key):
    C_IN, C_MID, C_OUT, C_MID_PAD = 32, 4, 32, 8
    k1, k2 = jax.random.split(key)
    # conv0: Conv2d(32, 4, 1) -> xavier_uniform, bias 0.01
    bound1 = math.sqrt(6.0 / (C_IN * 1 * 1 + C_MID * 1 * 1))
    w1_oihw = jax.random.uniform(k1, (C_MID, C_IN, 1, 1), jnp.float32,
                                 -bound1, bound1)
    b1_vec = jnp.full((C_MID,), 0.01, jnp.float32)
    # conv1: Conv2d(4, 32, 3, padding=1) -> xavier_uniform, bias 0.01
    bound2 = math.sqrt(6.0 / (C_MID * 3 * 3 + C_OUT * 3 * 3))
    w2_oihw = jax.random.uniform(k2, (C_OUT, C_MID, 3, 3), jnp.float32,
                                 -bound2, bound2)
    b2_vec = jnp.full((C_OUT,), 0.01, jnp.float32)

    # Kernel layouts (C_MID padded 4 -> 8 so every tile is sublane-full):
    #   w1t: (8, 32)  rows 4..7 zero
    #   b1 : (8, 1)   entries 4..7 MUST be 0.0 (keeps padded z1 rows == 0)
    #   w2t: (32, 72) K ordered [tap, cin_padded]; padded cin columns zero
    w1t = jnp.pad(w1_oihw.reshape(C_MID, C_IN),
                  ((0, C_MID_PAD - C_MID), (0, 0)))
    b1 = jnp.pad(b1_vec, (0, C_MID_PAD - C_MID)).reshape(C_MID_PAD, 1)
    w2_t = jnp.transpose(w2_oihw, (0, 2, 3, 1))            # (32, 3, 3, 4)
    w2_t = jnp.pad(w2_t, ((0, 0), (0, 0), (0, 0), (0, C_MID_PAD - C_MID)))
    w2t = w2_t.reshape(C_OUT, 9 * C_MID_PAD)
    b2 = b2_vec.reshape(C_OUT, 1)
    return (w1t, b1, w2t, b2), (w1_oihw, b1_vec, w2_oihw, b2_vec)


# ---------------------------------------------------------------------------
# Plain-JAX reference (for correctness check only)
# ---------------------------------------------------------------------------
def reference_forward(x_nchw, w1_oihw, b1_vec, w2_oihw, b2_vec):
    dn1 = lax.conv_dimension_numbers(x_nchw.shape, w1_oihw.shape,
                                     ("NCHW", "OIHW", "NCHW"))
    z = lax.conv_general_dilated(x_nchw, w1_oihw, (1, 1), "VALID",
                                 dimension_numbers=dn1)
    z = jnp.maximum(z + b1_vec.reshape(1, -1, 1, 1), 0.0)
    dn2 = lax.conv_dimension_numbers(z.shape, w2_oihw.shape,
                                     ("NCHW", "OIHW", "NCHW"))
    z = lax.conv_general_dilated(z, w2_oihw, (1, 1), [(1, 1), (1, 1)],
                                 dimension_numbers=dn2)
    z = jnp.maximum(z + b2_vec.reshape(1, -1, 1, 1), 0.0)
    return z


# ---------------------------------------------------------------------------
if __name__ == "__main__":
    key = jax.random.PRNGKey(0)
    kx, kp = jax.random.split(key)

    N, C, H, W = 2, 32, 16, 16
    x = jax.random.normal(kx, (N, C, H, W), jnp.float32)

    params, torch_layout = init_params(kp)

    fwd = jax.jit(small_module_forward)
    out = jax.block_until_ready(fwd(x, params))

    ref = reference_forward(x, *torch_layout)
    assert out.shape == (N, 32, H, W), out.shape
    assert jnp.allclose(out, ref, atol=1e-4, rtol=1e-4), (
        float(jnp.max(jnp.abs(out - ref))))

    print("KERNEL_OK")
</pallas_src>

<mosaic_0001>
module attributes {stable_mosaic.version = 11 : i64} {
  func.func @_fused_conv_kernel(%arg0: i32, %arg1: memref<1x32x256xf32, #tpu.memory_space<vmem>>, %arg2: memref<8x32xf32, #tpu.memory_space<vmem>>, %arg3: memref<8x1xf32, #tpu.memory_space<vmem>>, %arg4: memref<32x72xf32, #tpu.memory_space<vmem>>, %arg5: memref<32x1xf32, #tpu.memory_space<vmem>>, %arg6: memref<1x32x256xf32, #tpu.memory_space<vmem>>, %arg7: memref<72x256xf32, #tpu.memory_space<vmem>>) attributes {dimension_semantics = [#tpu.dimension_semantics<parallel>], iteration_bounds = array<i64: 2>, scalar_prefetch = 0 : i64, scratch_operands = 1 : i64, tpu.core_type = #tpu.core_type<tc>, window_params = [{transform_indices = @transform_0, window_bounds = array<i64: 1, 32, 256>}, {pipeline_mode = #tpu.pipeline_mode<synchronous>, transform_indices = @transform_1, window_bounds = array<i64: 8, 32>}, {pipeline_mode = #tpu.pipeline_mode<synchronous>, transform_indices = @transform_2, window_bounds = array<i64: 8, 1>}, {pipeline_mode = #tpu.pipeline_mode<synchronous>, transform_indices = @transform_3, window_bounds = array<i64: 32, 72>}, {pipeline_mode = #tpu.pipeline_mode<synchronous>, transform_indices = @transform_4, window_bounds = array<i64: 32, 1>}, {transform_indices = @transform_5, window_bounds = array<i64: 1, 32, 256>}]} {
    %0 = tpu.iota {dimensions = array<i32: 1>} : vector<1x256xi32>
    %c16_i32 = arith.constant 16 : i32
    %c0_i32 = arith.constant 0 : i32
    %1 = arith.cmpi eq, %c16_i32, %c0_i32 : i32
    %c1_i32 = arith.constant 1 : i32
    %2 = arith.select %1, %c1_i32, %c16_i32 : i32
    %3 = vector.broadcast %2 : i32 to vector<1x256xi32>
    %4 = arith.remsi %0, %3 : vector<1x256xi32>
    %c0_i32_0 = arith.constant 0 : i32
    %5 = vector.broadcast %c0_i32_0 : i32 to vector<1x256xi32>
    %6 = arith.cmpi ne, %4, %5 : vector<1x256xi32>
    %c0_i32_1 = arith.constant 0 : i32
    %7 = vector.broadcast %c0_i32_1 : i32 to vector<1x256xi32>
    %8 = arith.cmpi slt, %4, %7 : vector<1x256xi32>
    %c0_i32_2 = arith.constant 0 : i32
    %9 = arith.cmpi slt, %2, %c0_i32_2 : i32
    %10 = vector.broadcast %9 : i1 to vector<1x256xi1>
    %11 = vector.broadcast %10 : vector<1x256xi1> to vector<1x256xi1>
    %12 = arith.xori %8, %11 : vector<1x256xi1>
    %13 = arith.andi %12, %6 : vector<1x256xi1>
    %14 = vector.broadcast %2 : i32 to vector<1x256xi32>
    %15 = arith.addi %4, %14 : vector<1x256xi32>
    %16 = arith.select %13, %15, %4 : vector<1x256xi1>, vector<1x256xi32>
    %c16_i32_3 = arith.constant 16 : i32
    %17 = vector.broadcast %c16_i32_3 : i32 to vector<1x256xi32>
    %18 = arith.cmpi sge, %0, %17 : vector<1x256xi32>
    %c240_i32 = arith.constant 240 : i32
    %19 = vector.broadcast %c240_i32 : i32 to vector<1x256xi32>
    %20 = arith.cmpi slt, %0, %19 : vector<1x256xi32>
    %c1_i32_4 = arith.constant 1 : i32
    %21 = vector.broadcast %c1_i32_4 : i32 to vector<1x256xi32>
    %22 = arith.cmpi sge, %16, %21 : vector<1x256xi32>
    %c14_i32 = arith.constant 14 : i32
    %23 = vector.broadcast %c14_i32 : i32 to vector<1x256xi32>
    %24 = arith.cmpi sle, %16, %23 : vector<1x256xi32>
    %25 = arith.andi %18, %22 : vector<1x256xi1>
    %26 = arith.andi %18, %24 : vector<1x256xi1>
    %27 = arith.andi %20, %22 : vector<1x256xi1>
    %28 = arith.andi %20, %24 : vector<1x256xi1>
    %c0 = arith.constant 0 : index
    %c0_5 = arith.constant 0 : index
    %29 = vector.load %arg2[%c0, %c0_5] : memref<8x32xf32, #tpu.memory_space<vmem>>, vector<8x32xf32>
    %c0_6 = arith.constant 0 : index
    %c0_7 = arith.constant 0 : index
    %30 = vector.load %arg3[%c0_6, %c0_7] : memref<8x1xf32, #tpu.memory_space<vmem>>, vector<8x1xf32>
    %c0_8 = arith.constant 0 : index
    %c0_9 = arith.constant 0 : index
    %31 = vector.load %arg4[%c0_8, %c0_9] : memref<32x72xf32, #tpu.memory_space<vmem>>, vector<32x72xf32>
    %c0_10 = arith.constant 0 : index
    %c0_11 = arith.constant 0 : index
    %32 = vector.load %arg5[%c0_10, %c0_11] : memref<32x1xf32, #tpu.memory_space<vmem>>, vector<32x1xf32>
    %c0_i32_12 = arith.constant 0 : i32
    %33 = arith.index_cast %c0_i32_12 : i32 to index
    %c0_13 = arith.constant 0 : index
    %c0_14 = arith.constant 0 : index
    %34 = vector.load %arg1[%33, %c0_13, %c0_14] : memref<1x32x256xf32, #tpu.memory_space<vmem>>, vector<1x32x256xf32>
    %35 = vector.shape_cast %34 : vector<1x32x256xf32> to vector<32x256xf32>
    %cst = arith.constant dense<0.000000e+00> : vector<8x256xf32>
    %36 = tpu.matmul %29, %35, %cst {dimension_numbers = #tpu.dot_dimension_numbers<[1], [0], [0], [1], [0, 0, 1, 1], [], []>} : vector<8x32xf32>, vector<32x256xf32>, vector<8x256xf32> -> vector<8x256xf32>
    %37 = vector.broadcast %30 : vector<8x1xf32> to vector<8x256xf32>
    %38 = arith.addf %36, %37 : vector<8x256xf32>
    %cst_15 = arith.constant 0.000000e+00 : f32
    %39 = vector.broadcast %cst_15 : f32 to vector<8x256xf32>
    %40 = arith.maximumf %38, %39 : vector<8x256xf32>
    %c17_i32 = arith.constant 17 : i32
    %41 = tpu.dynamic_rotate %40 by %c17_i32 dim 1 : vector<8x256xf32>, i32 -> vector<8x256xf32>
    %cst_16 = arith.constant 0.000000e+00 : f32
    %42 = vector.shape_cast %25 : vector<1x256xi1> to vector<1x256xi1>
    %43 = vector.broadcast %42 : vector<1x256xi1> to vector<8x256xi1>
    %44 = vector.broadcast %cst_16 : f32 to vector<8x256xf32>
    %45 = arith.select %43, %41, %44 : vector<8x256xi1>, vector<8x256xf32>
    %c0_17 = arith.constant 0 : index
    %c0_18 = arith.constant 0 : index
    %46 = vector.load %arg7[%c0_17, %c0_18] : memref<72x256xf32, #tpu.memory_space<vmem>>, vector<8x256xf32>
    tpu.vector_store %arg7[%c0_17, %c0_18], %45 {strides = array<i32>} : memref<72x256xf32, #tpu.memory_space<vmem>>, vector<8x256xf32>,
    %c16_i32_19 = arith.constant 16 : i32
    %47 = tpu.dynamic_rotate %40 by %c16_i32_19 dim 1 : vector<8x256xf32>, i32 -> vector<8x256xf32>
    %cst_20 = arith.constant 0.000000e+00 : f32
    %48 = vector.shape_cast %18 : vector<1x256xi1> to vector<1x256xi1>
    %49 = vector.broadcast %48 : vector<1x256xi1> to vector<8x256xi1>
    %50 = vector.broadcast %cst_20 : f32 to vector<8x256xf32>
    %51 = arith.select %49, %47, %50 : vector<8x256xi1>, vector<8x256xf32>
    %c8 = arith.constant 8 : index
    %c0_21 = arith.constant 0 : index
    %52 = vector.load %arg7[%c8, %c0_21] : memref<72x256xf32, #tpu.memory_space<vmem>>, vector<8x256xf32>
    tpu.vector_store %arg7[%c8, %c0_21], %51 {strides = array<i32>} : memref<72x256xf32, #tpu.memory_space<vmem>>, vector<8x256xf32>,
    %c15_i32 = arith.constant 15 : i32
    %53 = tpu.dynamic_rotate %40 by %c15_i32 dim 1 : vector<8x256xf32>, i32 -> vector<8x256xf32>
    %cst_22 = arith.constant 0.000000e+00 : f32
    %54 = vector.shape_cast %26 : vector<1x256xi1> to vector<1x256xi1>
    %55 = vector.broadcast %54 : vector<1x256xi1> to vector<8x256xi1>
    %56 = vector.broadcast %cst_22 : f32 to vector<8x256xf32>
    %57 = arith.select %55, %53, %56 : vector<8x256xi1>, vector<8x256xf32>
    %c16 = arith.constant 16 : index
    %c0_23 = arith.constant 0 : index
    %58 = vector.load %arg7[%c16, %c0_23] : memref<72x256xf32, #tpu.memory_space<vmem>>, vector<8x256xf32>
    tpu.vector_store %arg7[%c16, %c0_23], %57 {strides = array<i32>} : memref<72x256xf32, #tpu.memory_space<vmem>>, vector<8x256xf32>,
    %c1_i32_24 = arith.constant 1 : i32
    %59 = tpu.dynamic_rotate %40 by %c1_i32_24 dim 1 : vector<8x256xf32>, i32 -> vector<8x256xf32>
    %cst_25 = arith.constant 0.000000e+00 : f32
    %60 = vector.shape_cast %22 : vector<1x256xi1> to vector<1x256xi1>
    %61 = vector.broadcast %60 : vector<1x256xi1> to vector<8x256xi1>
    %62 = vector.broadcast %cst_25 : f32 to vector<8x256xf32>
    %63 = arith.select %61, %59, %62 : vector<8x256xi1>, vector<8x256xf32>
    %c24 = arith.constant 24 : index
    %c0_26 = arith.constant 0 : index
    %64 = vector.load %arg7[%c24, %c0_26] : memref<72x256xf32, #tpu.memory_space<vmem>>, vector<8x256xf32>
    tpu.vector_store %arg7[%c24, %c0_26], %63 {strides = array<i32>} : memref<72x256xf32, #tpu.memory_space<vmem>>, vector<8x256xf32>,
    %c32 = arith.constant 32 : index
    %c0_27 = arith.constant 0 : index
    %65 = vector.load %arg7[%c32, %c0_27] : memref<72x256xf32, #tpu.memory_space<vmem>>, vector<8x256xf32>
    tpu.vector_store %arg7[%c32, %c0_27], %40 {strides = array<i32>} : memref<72x256xf32, #tpu.memory_space<vmem>>, vector<8x256xf32>,
    %c255_i32 = arith.constant 255 : i32
    %66 = tpu.dynamic_rotate %40 by %c255_i32 dim 1 : vector<8x256xf32>, i32 -> vector<8x256xf32>
    %cst_28 = arith.constant 0.000000e+00 : f32
    %67 = vector.shape_cast %24 : vector<1x256xi1> to vector<1x256xi1>
    %68 = vector.broadcast %67 : vector<1x256xi1> to vector<8x256xi1>
    %69 = vector.broadcast %cst_28 : f32 to vector<8x256xf32>
    %70 = arith.select %68, %66, %69 : vector<8x256xi1>, vector<8x256xf32>
    %c40 = arith.constant 40 : index
    %c0_29 = arith.constant 0 : index
    %71 = vector.load %arg7[%c40, %c0_29] : memref<72x256xf32, #tpu.memory_space<vmem>>, vector<8x256xf32>
    tpu.vector_store %arg7[%c40, %c0_29], %70 {strides = array<i32>} : memref<72x256xf32, #tpu.memory_space<vmem>>, vector<8x256xf32>,
    %c241_i32 = arith.constant 241 : i32
    %72 = tpu.dynamic_rotate %40 by %c241_i32 dim 1 : vector<8x256xf32>, i32 -> vector<8x256xf32>
    %cst_30 = arith.constant 0.000000e+00 : f32
    %73 = vector.shape_cast %27 : vector<1x256xi1> to vector<1x256xi1>
    %74 = vector.broadcast %73 : vector<1x256xi1> to vector<8x256xi1>
    %75 = vector.broadcast %cst_30 : f32 to vector<8x256xf32>
    %76 = arith.select %74, %72, %75 : vector<8x256xi1>, vector<8x256xf32>
    %c48 = arith.constant 48 : index
    %c0_31 = arith.constant 0 : index
    %77 = vector.load %arg7[%c48, %c0_31] : memref<72x256xf32, #tpu.memory_space<vmem>>, vector<8x256xf32>
    tpu.vector_store %arg7[%c48, %c0_31], %76 {strides = array<i32>} : memref<72x256xf32, #tpu.memory_space<vmem>>, vector<8x256xf32>,
    %c240_i32_32 = arith.constant 240 : i32
    %78 = tpu.dynamic_rotate %40 by %c240_i32_32 dim 1 : vector<8x256xf32>, i32 -> vector<8x256xf32>
    %cst_33 = arith.constant 0.000000e+00 : f32
    %79 = vector.shape_cast %20 : vector<1x256xi1> to vector<1x256xi1>
    %80 = vector.broadcast %79 : vector<1x256xi1> to vector<8x256xi1>
    %81 = vector.broadcast %cst_33 : f32 to vector<8x256xf32>
    %82 = arith.select %80, %78, %81 : vector<8x256xi1>, vector<8x256xf32>
    %c56 = arith.constant 56 : index
    %c0_34 = arith.constant 0 : index
    %83 = vector.load %arg7[%c56, %c0_34] : memref<72x256xf32, #tpu.memory_space<vmem>>, vector<8x256xf32>
    tpu.vector_store %arg7[%c56, %c0_34], %82 {strides = array<i32>} : memref<72x256xf32, #tpu.memory_space<vmem>>, vector<8x256xf32>,
    %c239_i32 = arith.constant 239 : i32
    %84 = tpu.dynamic_rotate %40 by %c239_i32 dim 1 : vector<8x256xf32>, i32 -> vector<8x256xf32>
    %cst_35 = arith.constant 0.000000e+00 : f32
    %85 = vector.shape_cast %28 : vector<1x256xi1> to vector<1x256xi1>
    %86 = vector.broadcast %85 : vector<1x256xi1> to vector<8x256xi1>
    %87 = vector.broadcast %cst_35 : f32 to vector<8x256xf32>
    %88 = arith.select %86, %84, %87 : vector<8x256xi1>, vector<8x256xf32>
    %c64 = arith.constant 64 : index
    %c0_36 = arith.constant 0 : index
    %89 = vector.load %arg7[%c64, %c0_36] : memref<72x256xf32, #tpu.memory_space<vmem>>, vector<8x256xf32>
    tpu.vector_store %arg7[%c64, %c0_36], %88 {strides = array<i32>} : memref<72x256xf32, #tpu.memory_space<vmem>>, vector<8x256xf32>,
    %c0_37 = arith.constant 0 : index
    %c0_38 = arith.constant 0 : index
    %90 = vector.load %arg7[%c0_37, %c0_38] : memref<72x256xf32, #tpu.memory_space<vmem>>, vector<72x256xf32>
    %cst_39 = arith.constant dense<0.000000e+00> : vector<32x256xf32>
    %91 = tpu.matmul %31, %90, %cst_39 {dimension_numbers = #tpu.dot_dimension_numbers<[1], [0], [0], [1], [0, 0, 1, 1], [], []>} : vector<32x72xf32>, vector<72x256xf32>, vector<32x256xf32> -> vector<32x256xf32>
    %92 = vector.broadcast %32 : vector<32x1xf32> to vector<32x256xf32>
    %93 = arith.addf %91, %92 : vector<32x256xf32>
    %cst_40 = arith.constant 0.000000e+00 : f32
    %94 = vector.broadcast %cst_40 : f32 to vector<32x256xf32>
    %95 = arith.maximumf %93, %94 : vector<32x256xf32>
    %96 = arith.index_cast %c0_i32_12 : i32 to index
    %c0_41 = arith.constant 0 : index
    %c0_42 = arith.constant 0 : index
    %97 = vector.load %arg6[%96, %c0_41, %c0_42] : memref<1x32x256xf32, #tpu.memory_space<vmem>>, vector<1x32x256xf32>
    %98 = vector.shape_cast %97 : vector<1x32x256xf32> to vector<32x256xf32>
    %99 = vector.shape_cast %95 : vector<32x256xf32> to vector<1x32x256xf32>
    tpu.vector_store %arg6[%96, %c0_41, %c0_42], %99 {strides = array<i32>} : memref<1x32x256xf32, #tpu.memory_space<vmem>>, vector<1x32x256xf32>,
    %c1_i32_43 = arith.constant 1 : i32
    return
  }
  func.func @transform_0(%arg0: i32) -> (i32, i32, i32) {
    %c0_i32 = arith.constant 0 : i32
    %c0_i32_0 = arith.constant 0 : i32
    %c0_i32_1 = arith.constant 0 : i32
    return %arg0, %c0_i32, %c0_i32_0 : i32, i32, i32
  }
  func.func @transform_1(%arg0: i32) -> (i32, i32) {
    %c0_i32 = arith.constant 0 : i32
    %c0_i32_0 = arith.constant 0 : i32
    %c0_i32_1 = arith.constant 0 : i32
    return %c0_i32, %c0_i32_0 : i32, i32
  }
  func.func @transform_2(%arg0: i32) -> (i32, i32) {
    %c0_i32 = arith.constant 0 : i32
    %c0_i32_0 = arith.constant 0 : i32
    %c0_i32_1 = arith.constant 0 : i32
    return %c0_i32, %c0_i32_0 : i32, i32
  }
  func.func @transform_3(%arg0: i32) -> (i32, i32) {
    %c0_i32 = arith.constant 0 : i32
    %c0_i32_0 = arith.constant 0 : i32
    %c0_i32_1 = arith.constant 0 : i32
    return %c0_i32, %c0_i32_0 : i32, i32
  }
  func.func @transform_4(%arg0: i32) -> (i32, i32) {
    %c0_i32 = arith.constant 0 : i32
    %c0_i32_0 = arith.constant 0 : i32
    %c0_i32_1 = arith.constant 0 : i32
    return %c0_i32, %c0_i32_0 : i32, i32
  }
  func.func @transform_5(%arg0: i32) -> (i32, i32, i32) {
    %c0_i32 = arith.constant 0 : i32
    %c0_i32_0 = arith.constant 0 : i32
    %c0_i32_1 = arith.constant 0 : i32
    return %arg0, %c0_i32, %c0_i32_0 : i32, i32, i32
  }
}

</mosaic_0001>

<bundles_post_ra>
// kernel: small_module_forward.1
= control target key start
LH: loop header
LB: loop body
LE: loop exit
PB: predicated region body
PF: predicated region fallthrough
CT: control target
= control target key end

     0   :  { %s880_s18 = smov 0   ;;  %s1068_s0 = inlined_call_operand.vmem [shape: f32[2,32,256], index: 0, kind: input, shape index: {}]   ;;  %s1069_s1 = inlined_call_operand.vmem [shape: f32[8,32], index: 1, kind: input, shape index: {}]   ;;  %s1070_s2 = inlined_call_operand.vmem [shape: f32[8,1], index: 2, kind: input, shape index: {}]   ;;  %s1071_s3 = inlined_call_operand.vmem [shape: f32[32,72], index: 3, kind: input, shape index: {}]   ;;  %s1072_s4 = inlined_call_operand.vmem [shape: f32[32,1], index: 4, kind: input, shape index: {}]   ;;  %s1073_s5 = inlined_call_operand.vmem [shape: f32[2,32,256], index: 5, kind: output, shape index: {}]  }
   0x1 LB: > { %s701_s19 = sadd.s32 4294967295, %s837_s18   ;;  %p705_p0 = scmp.ge.s32.totalorder %s837_s18, 1  ;;  %s837_s18 = sphi %s880_s18, %s15_s18  }
   0x2   : > { %p187_p1 = scmp.lt.s32.totalorder %s837_s18, 3 }
   0x4   : > { %p188_p2 = pnand %p705_p0, %p187_p1 }
   0x5   : > { %p215_p3 = scmp.lt.s32.totalorder (!%p188_p2), %s701_s19, 1  ;;  %v269_v0 = vld [vmem:[%s1070_s2] sm:$0xff] (!%p188_p2)  ;;  %v839_v1 = vmov (!%p188_p2), 0.0   ;;  %v840_v2 = vmov (!%p188_p2), 0   ;;  %vm291_vm0 = vcmask (!%p188_p2), 261120   ;;  %s841_s28 = smov (!%p188_p2), 16   ;;  %v225_v28 = vlaneseq (!%p188_p2) }
   0x6   : > { %191 = sbr.rel (%p188_p2) target bundleno = 611 (0x263), region = 40  ;;  %359 = vmatprep.mubr.f32.mxu0 (!%p188_p2), %v839_v1  ;;  %794 = vset.pattern.permute.xlu0 (!%p188_p2), %v840_v2  ;;  %v268_v15 = vld [vmem:[%s1069_s1] sm:$0xff] (!%p188_p2)  ;;  %s842_s29 = smov (!%p188_p2), 17   ;;  %v276_v25 = vld [vmem:[%s1072_s4 + $0x10] sm:$0xff] (!%p188_p2)  ;;  %v275_v26 = vld [vmem:[%s1072_s4 + $0x8] sm:$0xff] (!%p188_p2)  ;;  %vm849_vm9 = vmmov (!%p188_p2), 1  }
   0x7   : > { %288 = vperm.xlu0 (!%p188_p2), %794, %v269_v0   ;;  %611 = vmatprep.mubr.f32.mxu1 (!%p188_p2), %v839_v1  ;;  %s843_s30 = smov (!%p188_p2), 15   ;;  %s844_s6 = smov (!%p188_p2), 1   ;;  %v274_v24 = vld [vmem:[%s1072_s4] sm:$0xff] (!%p188_p2)  ;;  %v277_v27 = vld [vmem:[%s1072_s4 + $0x18] sm:$0xff] (!%p188_p2)  ;;  %v925_v29 = vand.u32 (!%p188_p2), 127, %v225_v28 }
   0x8   : > { %830 = vset.pattern.permute.xlu1 (!%p188_p2), %v840_v2  ;;  %s845_s7 = smov (!%p188_p2), 127   ;;  %s846_s8 = smov (!%p188_p2), 113   ;;  %v273_v28 = vld [vmem:[%s1071_s3 + $0x18] sm:$0xff] (!%p188_p2) }
   0x9   : > { %s847_s9 = smov (!%p188_p2), 112   ;;  %s848_s10 = smov (!%p188_p2), 111   ;;  %v928_v30 = vadd.s32 (!%p188_p2), 128, %v925_v29  ;;  %v232_v31 = vand.u32 (!%p188_p2), 15, %v925_v29  ;;  %vm252_vm1 = vcmp.ge.s32.totalorder (!%p188_p2), %v925_v29, 16  ;;  %vm387_vm3 = vcmp.lt.s32.totalorder (!%p188_p2), %v925_v29, 16 }
   0xa   : > { %vm372_vm4 = vcmp.lt.s32.totalorder (!%p188_p2), %v925_v29, 17  ;;  %vm402_vm7 = vcmp.lt.s32.totalorder (!%p188_p2), %v925_v29, 15  ;;  %vm417_vm11 = vcmp.lt.s32.totalorder (!%p188_p2), %v925_v29, 1 }
   0xb   : > { %v239_v32 = vand.u32 (!%p188_p2), 15, %v928_v30  ;;  %vm933_vm2 = vcmp.ge.s32.totalorder (!%p188_p2), %v232_v31, 1  ;;  %vm948_vm8 = vcmp.le.s32.totalorder (!%p188_p2), %v232_v31, 14 }
   0xc   : > { %vm260_vm6 = vmand (!%p188_p2), %vm252_vm1, %vm933_vm2 }
   0xd   : > { %s1091_s19 = smov (!%p215_p3, %s701_s19), 1  ;;  %vm939_vm5 = vcmp.ge.s32.totalorder %v239_v32, 1  ;;  %vm958_vm12 = vmpackc.low %vm252_vm1, %vm260_vm6  ;;  %vm962_vm13 = vcmp.le.s32.totalorder %v239_v32, 14 }
   0xe   : > { %s717_s22 = sshll.u32 %s1091_s19, 6  ;;  %vm742_vm10 = vmpackc.low %vm849_vm9, %vm939_vm5 }
   0xf   : > { %s219_s25 = scalar_lea.vmem %s1068_s0, %s717_s22  ;;  %vm970_vm14 = vmand %vm252_vm1, %vm948_vm8 }
  0x10   : > { %v279_v3 = vld [vmem:[%s219_s25 + $0x8] sm:$0xff]  ;;  %v281_v4 = vld [vmem:[%s219_s25 + $0x18] sm:$0xff]  ;;  %v278_v5 = vld [vmem:[%s219_s25] sm:$0xff] }
  0x11   : > { %v733_v6 = vpack.c.bf16 %v281_v4, %v279_v3  ;;  %v280_v7 = vld [vmem:[%s219_s25 + $0x10] sm:$0xff]  ;;  %v283_v8 = vld [vmem:[%s219_s25 + $0x28] sm:$0xff]  ;;  %v285_v9 = vld [vmem:[%s219_s25 + $0x38] sm:$0xff] }
  0x12   : > { %v735_v10 = vpack.c.bf16 %v280_v7, %v278_v5  ;;  %v737_v11 = vpack.c.bf16 %v285_v9, %v283_v8  ;;  %v282_v12 = vld [vmem:[%s219_s25 + $0x20] sm:$0xff]  ;;  %v284_v13 = vld [vmem:[%s219_s25 + $0x30] sm:$0xff]  ;;  %vm748_vm15 = vmpackc.low %vm939_vm5, %vm962_vm13 }
  0x13   : > { %734 = vmatprep.subr.bf16.mxu0 %v733_v6  ;;  %v739_v14 = vpack.c.bf16 %v284_v13, %v282_v12  ;;  %vm751_vm1 = vmpackc.low %vm933_vm2, %vm970_vm14 }
  0x14   : > { %736 = vmatpush1.bf16.msra.mxu0 %v735_v10  ;;  %vm1007_vm6 = vmpackc.low %vm948_vm8, %vm849_vm9 }
  0x15   : > { %738 = vmatprep.subr.bf16.mxu0 %v737_v11  ;;  %vm763_vm14 = vmpackc.low %vm849_vm9, %vm933_vm2 }
  0x18   : > { %740 = vmatpush1.bf16.msra.mxu0 %v739_v14 }
  0x1b   : > { %710 = vmatmul.mubr.msk.f32.vlgmr.msra.gmra.mrb[0].mxu0 %vm291_vm0, %v268_v15  ;;  %vm434_vm0 = vcmp.lt.s32.totalorder %v925_v29, 127 }
  0x1c   : > { %605 = vmatprep.mubr.f32.mxu0 %v839_v1 }
  0x86   : > { %v289_v16 = vpop.permute.xlu0 %288 }
  0xee   : > { %v361_v17 = vpop.f32.mrb[0].mxu0 }
  0xef   : > { %v362_v18 = vadd.f32 %v361_v17, %v289_v16  ;;  %v363_v19 = vpop.f32.mrb[1].mxu0 }
  0xf0   : > { %v364_v20 = vadd.f32 %v363_v19, %v289_v16 }
  0xf1   : > { %v905_v21 = vmax.f32 %v362_v18, 0.0 }
  0xf2   : > { %v907_v22 = vmax.f32 %v364_v20, 0.0 }
  0xf4   : > { %v800_v23 = vpack.i.bf16 %v907_v22, %v905_v21 }
  0xf6   : > { %801 = vrot.lane.b32.xlu1 %v800_v23, %s841_s28  ;;  %796 = vrot.lane.b32.xlu0 %v800_v23, %s842_s29 }
  0xfa   : > { %806 = vrot.lane.b32.xlu1 %v800_v23, %s843_s30  ;;  %811 = vrot.lane.b32.xlu0 %v800_v23, %s844_s6 }
  0xfe   : > { %816 = vrot.lane.b32.xlu1 %v800_v23, %s845_s7  ;;  %821 = vrot.lane.b32.xlu0 %v800_v23, %s846_s8  ;;  %s224_s7 = scalar_lea.vmem %s1073_s5, %s717_s22 }
 0x102   : > { %826 = vrot.lane.b32.xlu1 %v800_v23, %s847_s9  ;;  %475 = vrot.lane.b32.xlu0 %v905_v21, %s848_s10 }
 0x106   : > { %477 = vrot.lane.b32.xlu1 %v907_v22, %s848_s10  ;;  %510 = vperm.xlu0 %794, %v274_v24   ;;  %v270_v24 = vld [vmem:[%s1071_s3] sm:$0xff] }
 0x10a   : > { %520 = vperm.xlu0 %794, %v276_v25   ;;  %515 = vperm.xlu1 %830, %v275_v26   ;;  %v271_v26 = vld [vmem:[%s1071_s3 + $0x8] sm:$0xff] }
 0x10e   : > { %525 = vperm.xlu1 %830, %v277_v27   ;;  %v272_v27 = vld [vmem:[%s1071_s3 + $0x10] sm:$0xff] }
 0x168   : > { %v802_v34 = vpop.permute.xlu1 %801  ;;  %v797_v35 = vpop.permute.xlu0 %796 }
 0x169   : > { %v804_v37 = vunpack.i.h.bf16 %v802_v34  ;;  %v803_v38 = vunpack.i.l.bf16 %v802_v34  ;;  %v799_v39 = vunpack.i.h.bf16 %v797_v35  ;;  %v798_v40 = vunpack.i.l.bf16 %v797_v35 }
 0x16b   : > { %v388_v42 = vsel %vm387_vm3, %v803_v38, %v804_v37  ;;  %v389_v43 = vsel %vm387_vm3, %v804_v37, %v803_v38  ;;  %v373_v44 = vsel %vm372_vm4, %v798_v40, %v799_v39  ;;  %v374_v45 = vsel %vm372_vm4, %v799_v39, %v798_v40  ;;  %vm995_vm4 = vmpackc.low %vm962_vm13, %vm849_vm9 }
 0x16c   : > { %v741_v46 = vpack.c.bf16 %v388_v42, %v373_v44  ;;  %v744_v47 = vpack.c.bf16 %v389_v43, %v374_v45  ;;  %v807_v48 = vpop.permute.xlu1 %806  ;;  %v812_v49 = vpop.permute.xlu0 %811  ;;  %vm255_vm3 = vcmp.lt.s32.totalorder %v928_v30, 240 }
 0x16d   : > { %v809_v52 = vunpack.i.h.bf16 %v807_v48  ;;  %v808_v53 = vunpack.i.l.bf16 %v807_v48  ;;  %v814_v54 = vunpack.i.h.bf16 %v812_v49  ;;  %v813_v55 = vunpack.i.l.bf16 %v812_v49 }
 0x16e   : > { %743 = vmatprep.subr.msk.bf16.mxu0 %vm742_vm10, %v741_v46  ;;  %765 = vmatprep.subr.msk.bf16.mxu1 %vm742_vm10, %v741_v46  ;;  %vm464_vm10 = vcmp.lt.s32.totalorder %v925_v29, 112 }
 0x16f   : > { %v403_v57 = vsel %vm402_vm7, %v808_v53, %v809_v52  ;;  %v404_v58 = vsel %vm402_vm7, %v809_v52, %v808_v53  ;;  %v418_v59 = vsel %vm417_vm11, %v813_v55, %v814_v54  ;;  %v419_v60 = vsel %vm417_vm11, %v814_v54, %v813_v55  ;;  %746 = vmatpush1.bf16.msk.msra.mxu0 %vm958_vm12, %v744_v47  ;;  %vm265_vm11 = vmand %vm255_vm3, %vm939_vm5 }
 0x170   : > { %v747_v61 = vpack.c.bf16 %v418_v59, %v403_v57  ;;  %v750_v62 = vpack.c.bf16 %v419_v60, %v404_v58  ;;  %770 = vmatpush1.bf16.msk.msra.mxu1 %vm958_vm12, %v744_v47  ;;  %v817_v63 = vpop.permute.xlu1 %816  ;;  %v822_v0 = vpop.permute.xlu0 %821  ;;  %vm449_vm7 = vcmp.lt.s32.totalorder %v925_v29, 113  ;;  %vm760_vm12 = vmpackc.low %vm255_vm3, %vm265_vm11  ;;  %vm479_vm5 = vcmp.lt.s32.totalorder %v925_v29, 111 }
 0x171   : > { %v819_v2 = vunpack.i.h.bf16 %v817_v63  ;;  %v818_v3 = vunpack.i.l.bf16 %v817_v63  ;;  %v824_v7 = vunpack.i.h.bf16 %v822_v0  ;;  %v823_v8 = vunpack.i.l.bf16 %v822_v0 }
 0x172   : > { %749 = vmatprep.subr.msk.bf16.mxu0 %vm748_vm15, %v747_v61  ;;  %766 = vmatprep.subr.msk.bf16.mxu1 %vm748_vm15, %v747_v61  ;;  %vm267_vm15 = vmand %vm255_vm3, %vm962_vm13 }
 0x173   : > { %v435_v5 = vsel %vm434_vm0, %v818_v3, %v819_v2  ;;  %v436_v6 = vsel %vm434_vm0, %v819_v2, %v818_v3  ;;  %752 = vmatpush1.bf16.msk.msra.mxu0 %vm751_vm1, %v750_v62  ;;  %v450_v15 = vsel %vm449_vm7, %v823_v8, %v824_v7  ;;  %v451_v16 = vsel %vm449_vm7, %v824_v7, %v823_v8 }
 0x174   : > { %v753_v10 = vpack.c.bf16 %v436_v6, %v907_v22  ;;  %v756_v11 = vpack.c.bf16 %v435_v5, %v905_v21  ;;  %771 = vmatpush1.bf16.msk.msra.mxu1 %vm751_vm1, %v750_v62  ;;  %v827_v12 = vpop.permute.xlu1 %826  ;;  %v476_v22 = vpop.permute.xlu0 %475  ;;  %vm528_vm0 = vcmask 588800  }
 0x175   : > { %v829_v13 = vunpack.i.h.bf16 %v827_v12  ;;  %v828_v14 = vunpack.i.l.bf16 %v827_v12 }
 0x176   : > { %755 = vmatprep.subr.msk.bf16.mxu0 %vm995_vm4, %v753_v10  ;;  %767 = vmatprep.subr.msk.bf16.mxu1 %vm995_vm4, %v753_v10 }
 0x177   : > { %v465_v17 = vsel %vm464_vm10, %v828_v14, %v829_v13  ;;  %v466_v18 = vsel %vm464_vm10, %v829_v13, %v828_v14  ;;  %758 = vmatpush1.bf16.msk.msra.mxu0 %vm1007_vm6, %v756_v11 }
 0x178   : > { %v759_v19 = vpack.c.bf16 %v466_v18, %v451_v16  ;;  %v762_v20 = vpack.c.bf16 %v465_v17, %v450_v15  ;;  %772 = vmatpush1.bf16.msk.msra.mxu1 %vm1007_vm6, %v756_v11  ;;  %v478_v21 = vpop.permute.xlu1 %477 }
 0x179   : > { %v481_v23 = vsel %vm479_vm5, %v478_v21, %v476_v22  ;;  %v480_v25 = vsel %vm479_vm5, %v476_v22, %v478_v21 }
 0x17a   : > { %761 = vmatprep.subr.msk.bf16.mxu0 %vm760_vm12, %v759_v19  ;;  %768 = vmatprep.subr.msk.bf16.mxu1 %vm760_vm12, %v759_v19 }
 0x17b   : > { %764 = vmatpush1.bf16.msk.msra.mxu0 %vm763_vm14, %v762_v20 }
 0x17c   : > { %773 = vmatpush1.bf16.msk.msra.mxu1 %vm763_vm14, %v762_v20  ;;  %731 = vmatprep.subr.msk.mxu0 %vm267_vm15, %v481_v23 }
 0x17d   : > { %769 = vmatprep.subr.msk.mxu1 %vm267_vm15, %v481_v23 }
 0x17f   : > { %732 = vmatpush1.msk.msra.mxu0 %vm948_vm8, %v480_v25 }
 0x180   : > { %774 = vmatpush1.msk.msra.mxu1 %vm948_vm8, %v480_v25  ;;  %711 = vmatmul.mubr.msk.f32.vlgmr.msra.gmra.mrb[2].mxu0 %vm528_vm0, %v270_v24 }
 0x181   : > { %712 = vmatmul.mubr.msk.f32.vlgmr.msra.gmra.mrb[0].mxu1 %vm528_vm0, %v271_v26 }
 0x182   : > { %617 = vmatprep.mubr.f32.mxu1 %v839_v1 }
 0x185   : > { %713 = vmatmul.mubr.msk.f32.gmra.mrb[2].mxu1 %vm528_vm0, %v272_v27  ;;  %v511_v29 = vpop.permute.xlu0 %510 }
 0x186   : > { %623 = vmatprep.mubr.f32.mxu1 %v839_v1 }
 0x189   : > { %714 = vmatmul.mubr.msk.f32.gmra.mrb[4].mxu1 %vm528_vm0, %v273_v28  ;;  %v516_v30 = vpop.permute.xlu1 %515  ;;  %v521_v41 = vpop.permute.xlu0 %520 }
 0x18d   : > { %v526_v48 = vpop.permute.xlu1 %525 }
 0x253   : > { %v607_v31 = vpop.f32.mrb[2].mxu0 }
 0x254   : > { %v608_v32 = vadd.f32 %v607_v31, %v511_v29  ;;  %v613_v33 = vpop.f32.mrb[0].mxu1  ;;  %v609_v34 = vpop.f32.mrb[3].mxu0 }
 0x255   : > { %v614_v35 = vadd.f32 %v613_v33, %v516_v30  ;;  %v610_v36 = vadd.f32 %v609_v34, %v511_v29  ;;  %v615_v37 = vpop.f32.mrb[1].mxu1 }
 0x256   : > { %v630_v1 = vmax.f32 %v608_v32, 0.0  ;;  %v616_v38 = vadd.f32 %v615_v37, %v516_v30 }
 0x257   : > { %v632_v39 = vmax.f32 %v614_v35, 0.0  ;;  %v631_v40 = vmax.f32 %v610_v36, 0.0 }
 0x258   : > { %638 = vst [vmem:[%s224_s7] sm:$0xff] %v630_v1  ;;  %v633_v42 = vmax.f32 %v616_v38, 0.0  ;;  %v619_v43 = vpop.f32.mrb[2].mxu1 }
 0x259   : > { %640 = vst [vmem:[%s224_s7 + $0x10] sm:$0xff] %v632_v39  ;;  %639 = vst [vmem:[%s224_s7 + $0x8] sm:$0xff] %v631_v40  ;;  %v620_v44 = vadd.f32 %v619_v43, %v521_v41  ;;  %v621_v45 = vpop.f32.mrb[3].mxu1 }
 0x25a   : > { %641 = vst [vmem:[%s224_s7 + $0x18] sm:$0xff] %v633_v42  ;;  %v622_v46 = vadd.f32 %v621_v45, %v521_v41 }
 0x25b   : > { %v634_v47 = vmax.f32 %v620_v44, 0.0 }
 0x25c   : > { %v635_v49 = vmax.f32 %v622_v46, 0.0  ;;  %v625_v50 = vpop.f32.mrb[4].mxu1 }
 0x25d   : > { %642 = vst [vmem:[%s224_s7 + $0x20] sm:$0xff] %v634_v47  ;;  %v626_v51 = vadd.f32 %v625_v50, %v526_v48  ;;  %v627_v52 = vpop.f32.mrb[5].mxu1 }
 0x25e   : > { %643 = vst [vmem:[%s224_s7 + $0x28] sm:$0xff] %v635_v49  ;;  %v628_v53 = vadd.f32 %v627_v52, %v526_v48 }
 0x25f   : > { %v636_v54 = vmax.f32 %v626_v51, 0.0 }
 0x260   : > { %v637_v55 = vmax.f32 %v628_v53, 0.0 }
 0x261   : > { %644 = vst [vmem:[%s224_s7 + $0x30] sm:$0xff] %v636_v54 }
 0x262   : > { %645 = vst [vmem:[%s224_s7 + $0x38] sm:$0xff] %v637_v55 }
 0x263 PF: > { %s15_s18 = sadd.s32 1, %s837_s18  }
 0x264   : > { %p12_p4 = scmp.ge.s32.totalorder %s15_s18, 4  }
 0x266   :  { %14 = sbr.rel (!%p12_p4) target bundleno = 1 (0x1), region = 70 }

</bundles_post_ra>
